<compile_context>
chip_gen: v5e
topology: v5e:2x2
jax: 0.10.0
libtpu: 0.0.40
codegen_flags: <defaults>
</compile_context>

<pallas_src>
import jax
import jax.numpy as jnp
from jax.experimental import pallas as pl
from jax.experimental.pallas import tpu as pltpu

_LANES = 128
_SUBLANES = 8


def _cdiv(a, b):
    return -(-a // b)


def _detect_num_cores():
    """Best-effort TensorCore count: 2 on v7x (megacore), 1 on v5e/v6e.

    Falls back to 1, which is correct everywhere (just not maximal on v7x)."""
    try:
        info = pltpu.get_tpu_info()
        for attr in ("num_cores", "num_tensorcores", "tensorcores_per_chip",
                     "num_cores_per_chip"):
            v = getattr(info, attr, None)
            if isinstance(v, int) and v >= 1:
                return min(int(v), 2)
    except Exception:
        pass
    return 1


def _make_kernel(quantiles, tile_rows, rows_valid, need_mask, inv_denom):
    """Kernel factory: quantile levels, tile size, valid-row count and 1/(N*Q) are static."""
    quantiles = tuple(float(q) for q in quantiles)
    num_q = len(quantiles)
    groups = tile_rows // _SUBLANES

    def kernel(yt_ref, *rest):
        yp_refs = rest[:num_q]
        out_ref = rest[num_q]
        acc_ref = rest[num_q + 1]          # (8, 128) f32 — one vreg

        p = pl.program_id(0)
        t = pl.program_id(1)
        steps = pl.num_programs(1)

        @pl.when(t == 0)
        def _init():
            acc_ref[...] = jnp.zeros_like(acc_ref)

        # ---- steady state: pure VPU elementwise work on a lane-dense tile ----
        yt = yt_ref[...].astype(jnp.float32)              # (tile_rows, 128)
        contrib = None
        for i, q in enumerate(quantiles):
            err = yt - yp_refs[i][...].astype(jnp.float32)
            pin = jnp.maximum(q * err, (q - 1.0) * err)    # 2 mul + 1 max per element
            contrib = pin if contrib is None else contrib + pin

        if need_mask:
            # Rows past the logical end of the data are Pallas out-of-bounds rows:
            # their contents are undefined (NOT guaranteed zero), so zero their
            # contribution explicitly.  jnp.where (a select) also kills any NaNs
            # produced from garbage bits in the masked rows.
            base_row = (p * steps + t) * tile_rows
            row_ids = base_row + jax.lax.broadcasted_iota(
                jnp.int32, (tile_rows, _LANES), 0)
            contrib = jnp.where(row_ids < rows_valid, contrib, 0.0)

        # ---- fold the per-tile contribution down to one (8,128) vreg ----
        # (groups, 8, 128) keeps the native (8,128) vreg tiling; sum over the leading
        # axis is pure vreg adds (no cross-lane XLU work).
        if groups > 1:
            folded = contrib.reshape(groups, _SUBLANES, _LANES).sum(axis=0)
        else:
            folded = contrib
        acc_ref[...] += folded

        @pl.when(t == steps - 1)
        def _fini():
            out_ref[...] = acc_ref[...] * inv_denom

    return kernel


def multi_quantile_loss(y_pred_list, y_true, quantiles, *, num_cores=None,
                        max_tile_rows=2048):
    """y_pred_list: list of [N, 1] (or [N]) arrays; y_true: [N]; quantiles: static floats."""
    num_q = len(y_pred_list)
    assert num_q == len(quantiles) and num_q > 0
    n = int(y_true.shape[0])
    assert n > 0

    if num_cores is None:
        num_cores = _detect_num_cores()

    # ---- lane-dense tiling: rows of 128 lanes, tile_rows a multiple of 8 ----
    rows_valid = _cdiv(n, _LANES)
    # Don't split across cores unless each core gets at least one (8,128) row-group
    # (avoids DMA-ing and processing tiles that are 100% padding for tiny N).
    num_cores = max(1, min(num_cores, _cdiv(rows_valid, _SUBLANES)))
    rows_per_core = _cdiv(rows_valid, num_cores)
    tile_rows = max(_SUBLANES,
                    min(max_tile_rows, _cdiv(rows_per_core, _SUBLANES) * _SUBLANES))
    steps = _cdiv(rows_per_core, tile_rows)          # inner ("arbitrary") grid extent
    rows_covered = num_cores * steps * tile_rows
    need_mask = rows_covered > rows_valid            # static: grid reaches OOB rows

    n_lanes_total = rows_valid * _LANES

    def to_tiles(x):
        x = x.reshape(-1)                            # also handles the squeeze(-1)
        assert x.shape[0] == n
        if n_lanes_total != n:
            # Only when N is not a multiple of 128: pad the ragged last row so the
            # (rows, 128) reshape exists (zero err -> zero pinball in the pad region).
            x = jnp.pad(x, (0, n_lanes_total - n))
        return x.reshape(rows_valid, _LANES)         # free (no copy) when no pad

    yt_tiles = to_tiles(y_true)
    yp_tiles = [to_tiles(p) for p in y_pred_list]    # no stack/concat copy

    inv_denom = 1.0 / (float(n) * float(num_q))

    data_spec = pl.BlockSpec((tile_rows, _LANES), lambda p, t: (p * steps + t, 0))
    out_spec = pl.BlockSpec((_SUBLANES, _LANES), lambda p, t: (p, 0))

    bytes_accessed = (sum(int(a.size) * jnp.dtype(a.dtype).itemsize
                          for a in (yt_tiles, *yp_tiles))
                      + num_cores * _SUBLANES * _LANES * 4)
    cost = pl.CostEstimate(flops=5 * num_q * n_lanes_total, transcendentals=0,
                           bytes_accessed=bytes_accessed)

    partials = pl.pallas_call(
        _make_kernel(quantiles, tile_rows, rows_valid, need_mask, inv_denom),
        out_shape=jax.ShapeDtypeStruct((num_cores * _SUBLANES, _LANES), jnp.float32),
        grid_spec=pltpu.PrefetchScalarGridSpec(
            num_scalar_prefetch=0,
            grid=(num_cores, steps),
            in_specs=[data_spec] * (num_q + 1),
            out_specs=out_spec,
            scratch_shapes=[pltpu.VMEM((_SUBLANES, _LANES), jnp.float32)],
        ),
        compiler_params=pltpu.CompilerParams(
            dimension_semantics=("parallel", "arbitrary"),
            vmem_limit_bytes=32 * 1024 * 1024,
        ),
        cost_estimate=cost,
    )(yt_tiles, *yp_tiles)

    # Tiny final reduction (num_cores * 8 * 128 f32); already scaled by 1/(N*Q).
    return jnp.sum(partials)


def _reference(y_pred_list, y_true, quantiles):
    total = 0.0
    for i, q in enumerate(quantiles):
        y_pred = y_pred_list[i].reshape(-1)
        error = y_true - y_pred
        q_loss = jnp.maximum(q * error, (q - 1.0) * error)
        total = total + jnp.mean(q_loss)
    return total / len(quantiles)


if __name__ == "__main__":
    quantiles = (0.1, 0.5, 0.9)
    batch = 300  # deliberately not a multiple of 128 to exercise the masked-tail path

    key = jax.random.PRNGKey(0)
    k_true, *k_preds = jax.random.split(key, 1 + len(quantiles))

    y_true = jax.random.normal(k_true, (batch,), dtype=jnp.float32)
    # each "network head" output has shape [batch, 1], as the module's squeeze(-1) implies
    y_pred_list = [
        jax.random.normal(kp, (batch, 1), dtype=jnp.float32) for kp in k_preds
    ]

    loss = multi_quantile_loss(y_pred_list, y_true, quantiles)
    loss = jax.block_until_ready(loss)

    ref = _reference(y_pred_list, y_true, quantiles)
    assert jnp.allclose(loss, ref, rtol=1e-5, atol=1e-5), (loss, ref)

    print("KERNEL_OK")
</pallas_src>

<mosaic_0001>
module attributes {stable_mosaic.version = 11 : i64} {
  func.func @kernel(%arg0: i32, %arg1: i32, %arg2: memref<8x128xf32, #tpu.memory_space<vmem>>, %arg3: memref<8x128xf32, #tpu.memory_space<vmem>>, %arg4: memref<8x128xf32, #tpu.memory_space<vmem>>, %arg5: memref<8x128xf32, #tpu.memory_space<vmem>>, %arg6: memref<8x128xf32, #tpu.memory_space<vmem>>, %arg7: memref<8x128xf32, #tpu.memory_space<vmem>>) attributes {dimension_semantics = [#tpu.dimension_semantics<parallel>, #tpu.dimension_semantics<arbitrary>], iteration_bounds = array<i64: 1, 1>, scalar_prefetch = 0 : i64, scratch_operands = 1 : i64, tpu.core_type = #tpu.core_type<tc>, window_params = [{transform_indices = @transform_0, window_bounds = array<i64: 8, 128>}, {transform_indices = @transform_1, window_bounds = array<i64: 8, 128>}, {transform_indices = @transform_2, window_bounds = array<i64: 8, 128>}, {transform_indices = @transform_3, window_bounds = array<i64: 8, 128>}, {transform_indices = @transform_4, window_bounds = array<i64: 8, 128>}]} {
    %c0_i32 = arith.constant 0 : i32
    %0 = arith.cmpi eq, %arg1, %c0_i32 : i32
    %1 = arith.extui %0 : i1 to i32
    %c0_i32_0 = arith.constant 0 : i32
    %2 = arith.cmpi ne, %1, %c0_i32_0 : i32
    scf.if %2 {
      %cst_20 = arith.constant 0.000000e+00 : f32
      %43 = vector.broadcast %cst_20 : f32 to vector<8x128xf32>
      %c0_21 = arith.constant 0 : index
      %c0_22 = arith.constant 0 : index
      %44 = vector.load %arg7[%c0_21, %c0_22] : memref<8x128xf32, #tpu.memory_space<vmem>>, vector<8x128xf32>
      tpu.vector_store %arg7[%c0_21, %c0_22], %43 {strides = array<i32>} : memref<8x128xf32, #tpu.memory_space<vmem>>, vector<8x128xf32>,
    } else {
    }
    %c0 = arith.constant 0 : index
    %c0_1 = arith.constant 0 : index
    %3 = vector.load %arg2[%c0, %c0_1] : memref<8x128xf32, #tpu.memory_space<vmem>>, vector<8x128xf32>
    %c0_2 = arith.constant 0 : index
    %c0_3 = arith.constant 0 : index
    %4 = vector.load %arg3[%c0_2, %c0_3] : memref<8x128xf32, #tpu.memory_space<vmem>>, vector<8x128xf32>
    %5 = arith.subf %3, %4 : vector<8x128xf32>
    %cst = arith.constant 1.000000e-01 : f32
    %6 = vector.broadcast %cst : f32 to vector<8x128xf32>
    %7 = arith.mulf %6, %5 : vector<8x128xf32>
    %cst_4 = arith.constant -0.899999976 : f32
    %8 = vector.broadcast %cst_4 : f32 to vector<8x128xf32>
    %9 = arith.mulf %8, %5 : vector<8x128xf32>
    %10 = arith.maximumf %7, %9 : vector<8x128xf32>
    %c0_5 = arith.constant 0 : index
    %c0_6 = arith.constant 0 : index
    %11 = vector.load %arg4[%c0_5, %c0_6] : memref<8x128xf32, #tpu.memory_space<vmem>>, vector<8x128xf32>
    %12 = arith.subf %3, %11 : vector<8x128xf32>
    %cst_7 = arith.constant 5.000000e-01 : f32
    %13 = vector.broadcast %cst_7 : f32 to vector<8x128xf32>
    %14 = arith.mulf %13, %12 : vector<8x128xf32>
    %cst_8 = arith.constant -5.000000e-01 : f32
    %15 = vector.broadcast %cst_8 : f32 to vector<8x128xf32>
    %16 = arith.mulf %15, %12 : vector<8x128xf32>
    %17 = arith.maximumf %14, %16 : vector<8x128xf32>
    %18 = arith.addf %10, %17 : vector<8x128xf32>
    %c0_9 = arith.constant 0 : index
    %c0_10 = arith.constant 0 : index
    %19 = vector.load %arg5[%c0_9, %c0_10] : memref<8x128xf32, #tpu.memory_space<vmem>>, vector<8x128xf32>
    %20 = arith.subf %3, %19 : vector<8x128xf32>
    %cst_11 = arith.constant 0.899999976 : f32
    %21 = vector.broadcast %cst_11 : f32 to vector<8x128xf32>
    %22 = arith.mulf %21, %20 : vector<8x128xf32>
    %cst_12 = arith.constant -1.000000e-01 : f32
    %23 = vector.broadcast %cst_12 : f32 to vector<8x128xf32>
    %24 = arith.mulf %23, %20 : vector<8x128xf32>
    %25 = arith.maximumf %22, %24 : vector<8x128xf32>
    %26 = arith.addf %18, %25 : vector<8x128xf32>
    %c1_i32 = arith.constant 1 : i32
    %27 = arith.muli %arg0, %c1_i32 : i32
    %28 = arith.addi %27, %arg1 : i32
    %c8_i32 = arith.constant 8 : i32
    %29 = arith.muli %28, %c8_i32 : i32
    %30 = tpu.iota {dimensions = array<i32: 0>} : vector<8x128xi32>
    %31 = vector.broadcast %29 : i32 to vector<8x128xi32>
    %32 = arith.addi %31, %30 : vector<8x128xi32>
    %c3_i32 = arith.constant 3 : i32
    %33 = vector.broadcast %c3_i32 : i32 to vector<8x128xi32>
    %34 = arith.cmpi slt, %32, %33 : vector<8x128xi32>
    %cst_13 = arith.constant 0.000000e+00 : f32
    %35 = vector.broadcast %cst_13 : f32 to vector<8x128xf32>
    %36 = arith.select %34, %26, %35 : vector<8x128xi1>, vector<8x128xf32>
    %c0_14 = arith.constant 0 : index
    %c0_15 = arith.constant 0 : index
    %37 = vector.load %arg7[%c0_14, %c0_15] : memref<8x128xf32, #tpu.memory_space<vmem>>, vector<8x128xf32>
    %38 = arith.addf %37, %36 : vector<8x128xf32>
    %c0_16 = arith.constant 0 : index
    %c0_17 = arith.constant 0 : index
    %39 = vector.load %arg7[%c0_16, %c0_17] : memref<8x128xf32, #tpu.memory_space<vmem>>, vector<8x128xf32>
    tpu.vector_store %arg7[%c0_16, %c0_17], %38 {strides = array<i32>} : memref<8x128xf32, #tpu.memory_space<vmem>>, vector<8x128xf32>,
    %c0_i32_18 = arith.constant 0 : i32
    %40 = arith.cmpi eq, %arg1, %c0_i32_18 : i32
    %41 = arith.extui %40 : i1 to i32
    %c0_i32_19 = arith.constant 0 : i32
    %42 = arith.cmpi ne, %41, %c0_i32_19 : i32
    scf.if %42 {
      %c0_20 = arith.constant 0 : index
      %c0_21 = arith.constant 0 : index
      %43 = vector.load %arg7[%c0_20, %c0_21] : memref<8x128xf32, #tpu.memory_space<vmem>>, vector<8x128xf32>
      %cst_22 = arith.constant 0.00111111114 : f32
      %44 = vector.broadcast %cst_22 : f32 to vector<8x128xf32>
      %45 = arith.mulf %43, %44 : vector<8x128xf32>
      %c0_23 = arith.constant 0 : index
      %c0_24 = arith.constant 0 : index
      %46 = vector.load %arg6[%c0_23, %c0_24] : memref<8x128xf32, #tpu.memory_space<vmem>>, vector<8x128xf32>
      tpu.vector_store %arg6[%c0_23, %c0_24], %45 {strides = array<i32>} : memref<8x128xf32, #tpu.memory_space<vmem>>, vector<8x128xf32>,
    } else {
    }
    return
  }
  func.func @transform_0(%arg0: i32, %arg1: i32) -> (i32, i32) {
    %c1_i32 = arith.constant 1 : i32
    %0 = arith.muli %arg0, %c1_i32 : i32
    %1 = arith.addi %0, %arg1 : i32
    %c0_i32 = arith.constant 0 : i32
    %c0_i32_0 = arith.constant 0 : i32
    return %1, %c0_i32 : i32, i32
  }
  func.func @transform_1(%arg0: i32, %arg1: i32) -> (i32, i32) {
    %c1_i32 = arith.constant 1 : i32
    %0 = arith.muli %arg0, %c1_i32 : i32
    %1 = arith.addi %0, %arg1 : i32
    %c0_i32 = arith.constant 0 : i32
    %c0_i32_0 = arith.constant 0 : i32
    return %1, %c0_i32 : i32, i32
  }
  func.func @transform_2(%arg0: i32, %arg1: i32) -> (i32, i32) {
    %c1_i32 = arith.constant 1 : i32
    %0 = arith.muli %arg0, %c1_i32 : i32
    %1 = arith.addi %0, %arg1 : i32
    %c0_i32 = arith.constant 0 : i32
    %c0_i32_0 = arith.constant 0 : i32
    return %1, %c0_i32 : i32, i32
  }
  func.func @transform_3(%arg0: i32, %arg1: i32) -> (i32, i32) {
    %c1_i32 = arith.constant 1 : i32
    %0 = arith.muli %arg0, %c1_i32 : i32
    %1 = arith.addi %0, %arg1 : i32
    %c0_i32 = arith.constant 0 : i32
    %c0_i32_0 = arith.constant 0 : i32
    return %1, %c0_i32 : i32, i32
  }
  func.func @transform_4(%arg0: i32, %arg1: i32) -> (i32, i32) {
    %c0_i32 = arith.constant 0 : i32
    %c0_i32_0 = arith.constant 0 : i32
    return %arg0, %c0_i32 : i32, i32
  }
}

</mosaic_0001>

<bundles_post_ra>
// kernel: tpu_custom_call.1
= control target key start
LH: loop header
LB: loop body
LE: loop exit
PB: predicated region body
PF: predicated region fallthrough
CT: control target
= control target key end

     0   :  { %9 = vsyncpa [#allocation4], 0  ;;  %s374_s0 = inlined_call_operand.hbm [shape: f32[3,128], index: 0, kind: input, shape index: {}]   ;;  %s375_s1 = inlined_call_operand.hbm [shape: f32[3,128], index: 1, kind: input, shape index: {}]   ;;  %s376_s2 = inlined_call_operand.hbm [shape: f32[3,128], index: 2, kind: input, shape index: {}]   ;;  %s377_s3 = inlined_call_operand.hbm [shape: f32[3,128], index: 3, kind: input, shape index: {}]   ;;  %s378_s4 = inlined_call_operand.hbm [shape: f32[8,128], index: 4, kind: output, shape index: {}]  }
   0x1   :  { %10 = vsyncpa [#allocation7], 0 }
   0x2   :  { %11 = vsyncpa [#allocation10], 0 }
   0x3   :  { %12 = vsyncpa [#allocation5], 0 }
   0x4   :  { %21 = vsyncadd [#allocation4], 64  ;;  %s26_s17 = sshll.u32 %s374_s0, 4  ;;  %s327_s18 = smov [#allocation3]   ;;  %s27_s17 = int_to_ptr.hbm [resolvable:$true] %s26_s17 }
   0x5   :  { %s28_s19 = sshll.u32 %s327_s18, 4  ;;  %s328_s20 = smov 64   ;;  %s29_s19 = int_to_ptr.vmem [resolvable:$true] %s28_s19 }
   0x6   :  { %s329_s21 = smov 4  }
   0x7   :  { %34 = dma.hbm_to_vmem [thread:$0]  %s27_s17, 64, %s29_s19, [#allocation4], %s328_s20, %s328_s20, %s329_s21  }
   0x8   :  { %43 = vsyncadd [#allocation7], 64  ;;  %s48_s24 = sshll.u32 %s375_s1, 4  ;;  %s330_s25 = smov [#allocation6]   ;;  %s49_s24 = int_to_ptr.hbm [resolvable:$true] %s48_s24 }
   0x9   :  { %s50_s26 = sshll.u32 %s330_s25, 4  ;;  %s51_s26 = int_to_ptr.vmem [resolvable:$true] %s50_s26 }
   0xa   :  { %56 = dma.hbm_to_vmem [thread:$0]  %s49_s24, 64, %s51_s26, [#allocation7], %s328_s20, %s328_s20, %s329_s21  }
   0xb   :  { %65 = vsyncadd [#allocation7], 64  ;;  %s70_s28 = sshll.u32 %s376_s2, 4  ;;  %s331_s29 = smov [#allocation8]   ;;  %s71_s28 = int_to_ptr.hbm [resolvable:$true] %s70_s28 }
   0xc   :  { %s72_s30 = sshll.u32 %s331_s29, 4  ;;  %s73_s30 = int_to_ptr.vmem [resolvable:$true] %s72_s30 }
   0xd   :  { %78 = dma.hbm_to_vmem [thread:$0]  %s71_s28, 64, %s73_s30, [#allocation7], %s328_s20, %s328_s20, %s329_s21  }
   0xe   :  { %87 = vsyncadd [#allocation10], 64  ;;  %s92_s1 = sshll.u32 %s377_s3, 4  ;;  %s332_s7 = smov [#allocation9]   ;;  %s93_s1 = int_to_ptr.hbm [resolvable:$true] %s92_s1 }
   0xf   :  { %s94_s8 = sshll.u32 %s332_s7, 4  ;;  %s95_s8 = int_to_ptr.vmem [resolvable:$true] %s94_s8 }
  0x10   :  { %100 = dma.hbm_to_vmem [thread:$0]  %s93_s1, 64, %s95_s8, [#allocation10], %s328_s20, %s328_s20, %s329_s21  }
  0x11   :  { %319 = dma.done.wait [#allocation4], 128  }
  0x12   :  { %320 = vsyncadd [#allocation4], 4294967168 }
  0x13   :  { %321 = dma.done.wait [#allocation7], 256  }
  0x14   :  { %322 = vsyncadd [#allocation7], 4294967040 }
  0x15   :  { %323 = dma.done.wait [#allocation10], 128  }
  0x16   :  { %324 = vsyncadd [#allocation10], 4294967168  ;;  %v138_v0 = vld [vmem:[#allocation3] sm:$0xff]  ;;  %v139_v1 = vld [vmem:[#allocation6] sm:$0xff]  ;;  %v158_v3 = vlaneseq  ;;  %s333_s2 = smov [#allocation11]   ;;  %s180_s11 = sshll.u32 %s378_s4, 4  ;;  %s181_s11 = int_to_ptr.hbm [resolvable:$true] %s180_s11 }
  0x17   :  { %v144_v2 = vld [vmem:[#allocation8] sm:$0xff]  ;;  %v140_v4 = vsub.f32 %v138_v0, %v139_v1  ;;  %v150_v6 = vld [vmem:[#allocation9] sm:$0xff]  ;;  %s178_s3 = sshll.u32 %s333_s2, 4  ;;  %s179_s3 = int_to_ptr.vmem [resolvable:$true] %s178_s3 }
  0x18   :  { %v145_v5 = vsub.f32 %v138_v0, %v144_v2  ;;  %v151_v7 = vsub.f32 %v138_v0, %v150_v6  ;;  %v159_v14 = vshrl.u32 %v158_v3, 7 }
  0x19   :  { %v141_v8 = vmul.f32 0.1, %v140_v4  ;;  %v142_v9 = vmul.f32 -0.9, %v140_v4 }
  0x1a   :  { %v146_v10 = vmul.f32 0.5, %v145_v5  ;;  %v147_v11 = vmul.f32 -0.5, %v145_v5  ;;  %v152_v12 = vmul.f32 0.9, %v151_v7  ;;  %v153_v13 = vmul.f32 -0.1, %v151_v7 }
  0x1b   :  { %v143_v15 = vmax.f32 %v141_v8, %v142_v9  ;;  %vm162_vm0 = vcmp.lt.s32.totalorder %v159_v14, 3 }
  0x1c   :  { %v148_v16 = vmax.f32 %v146_v10, %v147_v11  ;;  %v154_v17 = vmax.f32 %v152_v12, %v153_v13 }
  0x1e   :  { %v149_v18 = vadd.f32 %v148_v16, %v143_v15 }
  0x20   :  { %v155_v19 = vadd.f32 %v154_v17, %v149_v18 }
  0x22   :  { %v163_v20 = vsel %vm162_vm0, %v155_v19, 0.0 }
  0x23   :  { %v171_v21 = vmul.f32 0.0011111111, %v163_v20 }
  0x25   :  { %172 = vst [vmem:[#allocation11] sm:$0xff] %v171_v21 }
  0x26   :  { %183 = dma.vmem_to_hbm [thread:$0]  %s179_s3, 128, %s181_s11, [#allocation5]  }
  0x27   :  { %325 = dma.done.wait [#allocation5], 128  }
  0x28   :  { %326 = vsyncadd [#allocation5], 4294967168 }
  0x29   :  { %188 = vsyncpa [#allocation4], 1 }
  0x2a   :  { %189 = vsyncpa [#allocation7], 1 }
  0x2b   :  { %190 = vsyncpa [#allocation10], 1 }
  0x2c   :  { %191 = vsyncpa [#allocation5], 1 }

</bundles_post_ra>
